<compile_context>
chip_gen: v5e
topology: v5e:2x2
jax: 0.10.0
libtpu: 0.0.40
codegen_flags: <defaults>
</compile_context>

<pallas_src>
import jax
import jax.numpy as jnp
from jax.experimental import pallas as pl
from jax.experimental.pallas import tpu as pltpu

IN_FEATURES = 10
HIDDEN = 10
OUT_FEATURES = 10

# Batch tile for the gridded path (multiple of 8 for the sublane constraint).
TILE_B = 1024
# At/below this, use the single gridless invocation (no pipeline prologue).
_GRIDLESS_MAX_B = 1024
# Explicit scoped-VMEM request: safe on v5e (16 MiB default) through v7x.
_VMEM_LIMIT_BYTES = 32 * 1024 * 1024


def mynet_kernel(x_ref, w1_ref, b1_ref, w2_ref, b2_ref, o_ref):
    # x_ref: (tile_b, 10); w1_ref/w2_ref: (in, out) = (10, 10) (pre-transposed
    # once in prepare_params, so no in-kernel XLU transpose); b*_ref: (1, 10).
    x = x_ref[...]
    # lin1: x @ W1 + b1, then ReLU (MXU matmul + VPU max).
    h = jnp.dot(x, w1_ref[...], preferred_element_type=jnp.float32) + b1_ref[...]
    h = jnp.maximum(h, 0.0)
    # lin2: h @ W2 + b2.
    y = jnp.dot(h, w2_ref[...], preferred_element_type=jnp.float32) + b2_ref[...]
    o_ref[...] = y.astype(o_ref.dtype)


def _cost_estimate(batch):
    # 2 matmuls: ~2 * B * 10 * 10 MACs each (+ bias/ReLU, negligible).
    flops = 4 * batch * IN_FEATURES * HIDDEN
    bytes_accessed = (
        batch * IN_FEATURES * 4            # x in
        + batch * OUT_FEATURES * 4         # y out
        + 2 * IN_FEATURES * HIDDEN * 4     # weights
        + 2 * HIDDEN * 4                   # biases
    )
    return pl.CostEstimate(flops=flops, transcendentals=0,
                           bytes_accessed=bytes_accessed)


def prepare_params(w1, b1, w2, b2):
    """One-time conversion from PyTorch layout to kernel layout.

    w1, w2: (out, in) -> (in, out); b1, b2: (out,) -> (1, out).
    Do this ONCE at parameter-prep time, not inside the per-step forward.
    """
    w1_t = jnp.transpose(w1)
    w2_t = jnp.transpose(w2)
    b1_2d = jnp.reshape(b1, (1, HIDDEN))
    b2_2d = jnp.reshape(b2, (1, OUT_FEATURES))
    return w1_t, b1_2d, w2_t, b2_2d


def _grid_geometry(batch):
    """Pick (num_tiles, tile_b): tile_b a multiple of 8, grid count even
    (best effort) so v7x's two TensorCores both get work."""
    num_tiles = -(-batch // TILE_B)          # cdiv
    if num_tiles % 2:
        num_tiles += 1                       # even grid for the 2-TC split
    tile_b = -(-batch // num_tiles)          # balance rows across tiles
    tile_b = ((tile_b + 7) // 8) * 8         # sublane multiple
    num_tiles = -(-batch // tile_b)          # drop any fully-empty tail tile
    return num_tiles, tile_b


def mynet_forward(x, w1_t, b1_2d, w2_t, b2_2d):
    """x: (B, 10). Params already in kernel layout (see prepare_params)."""
    B = x.shape[0]
    vmem = pltpu.MemorySpace.VMEM

    if B <= _GRIDLESS_MAX_B:
        # Small batch: single gridless invocation, everything VMEM-resident
        # (<= ~1 MiB even with the 128-lane padding of the 10-wide axis).
        return pl.pallas_call(
            mynet_kernel,
            out_shape=jax.ShapeDtypeStruct((B, OUT_FEATURES), x.dtype),
            in_specs=[
                pl.BlockSpec(memory_space=vmem),  # x
                pl.BlockSpec(memory_space=vmem),  # w1 (in, out)
                pl.BlockSpec(memory_space=vmem),  # b1
                pl.BlockSpec(memory_space=vmem),  # w2 (in, out)
                pl.BlockSpec(memory_space=vmem),  # b2
            ],
            out_specs=pl.BlockSpec(memory_space=vmem),
            compiler_params=pltpu.CompilerParams(
                vmem_limit_bytes=_VMEM_LIMIT_BYTES,
            ),
            cost_estimate=_cost_estimate(B),
        )(x, w1_t, b1_2d, w2_t, b2_2d)

    # Large batch: tile the batch axis (double-buffered by BlockSpec). Works
    # for any B -- the partial last block is clipped by Pallas (padded reads,
    # masked writes), so VMEM stays bounded regardless of B.
    num_tiles, tile_b = _grid_geometry(B)
    return pl.pallas_call(
        mynet_kernel,
        out_shape=jax.ShapeDtypeStruct((B, OUT_FEATURES), x.dtype),
        grid_spec=pl.GridSpec(
            grid=(num_tiles,),
            in_specs=[
                pl.BlockSpec((tile_b, IN_FEATURES), lambda i: (i, 0)),
                pl.BlockSpec((IN_FEATURES, HIDDEN), lambda i: (0, 0)),
                pl.BlockSpec((1, HIDDEN), lambda i: (0, 0)),
                pl.BlockSpec((HIDDEN, OUT_FEATURES), lambda i: (0, 0)),
                pl.BlockSpec((1, OUT_FEATURES), lambda i: (0, 0)),
            ],
            out_specs=pl.BlockSpec((tile_b, OUT_FEATURES), lambda i: (i, 0)),
        ),
        compiler_params=pltpu.CompilerParams(
            dimension_semantics=("parallel",),
            vmem_limit_bytes=_VMEM_LIMIT_BYTES,
        ),
        cost_estimate=_cost_estimate(B),
    )(x, w1_t, b1_2d, w2_t, b2_2d)


def init_params(key):
    # Deterministic init mimicking PyTorch Linear default:
    # uniform(-1/sqrt(fan_in), 1/sqrt(fan_in)) for weight and bias.
    # Weights kept in PyTorch layout (out, in); prepare_params converts once.
    k1, k2, k3, k4 = jax.random.split(key, 4)
    bound1 = 1.0 / jnp.sqrt(IN_FEATURES)
    bound2 = 1.0 / jnp.sqrt(HIDDEN)
    w1 = jax.random.uniform(k1, (HIDDEN, IN_FEATURES), jnp.float32, -bound1, bound1)
    b1 = jax.random.uniform(k2, (HIDDEN,), jnp.float32, -bound1, bound1)
    w2 = jax.random.uniform(k3, (OUT_FEATURES, HIDDEN), jnp.float32, -bound2, bound2)
    b2 = jax.random.uniform(k4, (OUT_FEATURES,), jnp.float32, -bound2, bound2)
    return w1, b1, w2, b2


def _reference(x, w1, b1, w2, b2):
    # Same math as the PyTorch forward: relu(x @ W1.T + b1) @ W2.T + b2
    h = jnp.maximum(x @ w1.T + b1, 0.0)
    return h @ w2.T + b2


if __name__ == "__main__":
    key = jax.random.PRNGKey(0)
    kx, kp, kx2, kx3 = jax.random.split(key, 4)
    w1, b1, w2, b2 = init_params(kp)
    params = prepare_params(w1, b1, w2, b2)  # one-time layout conversion

    # 1) Small batch -> gridless path.
    B = 8
    x = jax.random.normal(kx, (B, IN_FEATURES), jnp.float32)
    out = jax.block_until_ready(mynet_forward(x, *params))
    ref = _reference(x, w1, b1, w2, b2)
    assert out.shape == (B, OUT_FEATURES)
    assert jnp.allclose(out, ref, atol=1e-5, rtol=1e-5)

    # 2) Larger batch with an odd natural tile count -> even grid for v7x's 2 TCs.
    B2 = 3 * TILE_B
    x2 = jax.random.normal(kx2, (B2, IN_FEATURES), jnp.float32)
    out2 = jax.block_until_ready(mynet_forward(x2, *params))
    ref2 = _reference(x2, w1, b1, w2, b2)
    assert out2.shape == (B2, OUT_FEATURES)
    assert jnp.allclose(out2, ref2, atol=1e-5, rtol=1e-5)

    # 3) Ragged large batch (not a tile multiple) -> gridded path with a
    #    clipped partial last block (the old code would have gone gridless).
    B3 = 2500
    x3 = jax.random.normal(kx3, (B3, IN_FEATURES), jnp.float32)
    out3 = jax.block_until_ready(mynet_forward(x3, *params))
    ref3 = _reference(x3, w1, b1, w2, b2)
    assert out3.shape == (B3, OUT_FEATURES)
    assert jnp.allclose(out3, ref3, atol=1e-5, rtol=1e-5)

    print("KERNEL_OK")
</pallas_src>

<mosaic_0001>
module attributes {stable_mosaic.version = 11 : i64} {
  func.func @mynet_kernel(%arg0: memref<8x10xf32, #tpu.memory_space<vmem>>, %arg1: memref<10x10xf32, #tpu.memory_space<vmem>>, %arg2: memref<1x10xf32, #tpu.memory_space<vmem>>, %arg3: memref<10x10xf32, #tpu.memory_space<vmem>>, %arg4: memref<1x10xf32, #tpu.memory_space<vmem>>, %arg5: memref<8x10xf32, #tpu.memory_space<vmem>>) attributes {dimension_semantics = [], scalar_prefetch = 0 : i64, scratch_operands = 0 : i64, tpu.core_type = #tpu.core_type<tc>} {
    %c0 = arith.constant 0 : index
    %c0_0 = arith.constant 0 : index
    %0 = vector.load %arg0[%c0, %c0_0] : memref<8x10xf32, #tpu.memory_space<vmem>>, vector<8x10xf32>
    %c0_1 = arith.constant 0 : index
    %c0_2 = arith.constant 0 : index
    %1 = vector.load %arg1[%c0_1, %c0_2] : memref<10x10xf32, #tpu.memory_space<vmem>>, vector<10x10xf32>
    %cst = arith.constant dense<0.000000e+00> : vector<8x10xf32>
    %2 = tpu.matmul %0, %1, %cst {dimension_numbers = #tpu.dot_dimension_numbers<[1], [0], [0], [1], [0, 0, 1, 1], [], []>} : vector<8x10xf32>, vector<10x10xf32>, vector<8x10xf32> -> vector<8x10xf32>
    %c0_3 = arith.constant 0 : index
    %c0_4 = arith.constant 0 : index
    %3 = vector.load %arg2[%c0_3, %c0_4] : memref<1x10xf32, #tpu.memory_space<vmem>>, vector<1x10xf32>
    %4 = vector.broadcast %3 : vector<1x10xf32> to vector<8x10xf32>
    %5 = arith.addf %2, %4 : vector<8x10xf32>
    %cst_5 = arith.constant 0.000000e+00 : f32
    %6 = vector.broadcast %cst_5 : f32 to vector<8x10xf32>
    %7 = arith.maximumf %5, %6 : vector<8x10xf32>
    %c0_6 = arith.constant 0 : index
    %c0_7 = arith.constant 0 : index
    %8 = vector.load %arg3[%c0_6, %c0_7] : memref<10x10xf32, #tpu.memory_space<vmem>>, vector<10x10xf32>
    %cst_8 = arith.constant dense<0.000000e+00> : vector<8x10xf32>
    %9 = tpu.matmul %7, %8, %cst_8 {dimension_numbers = #tpu.dot_dimension_numbers<[1], [0], [0], [1], [0, 0, 1, 1], [], []>} : vector<8x10xf32>, vector<10x10xf32>, vector<8x10xf32> -> vector<8x10xf32>
    %c0_9 = arith.constant 0 : index
    %c0_10 = arith.constant 0 : index
    %10 = vector.load %arg4[%c0_9, %c0_10] : memref<1x10xf32, #tpu.memory_space<vmem>>, vector<1x10xf32>
    %11 = vector.broadcast %10 : vector<1x10xf32> to vector<8x10xf32>
    %12 = arith.addf %9, %11 : vector<8x10xf32>
    %c0_11 = arith.constant 0 : index
    %c0_12 = arith.constant 0 : index
    %13 = vector.load %arg5[%c0_11, %c0_12] : memref<8x10xf32, #tpu.memory_space<vmem>>, vector<8x10xf32>
    tpu.vector_store %arg5[%c0_11, %c0_12], %12 {strides = array<i32>} : memref<8x10xf32, #tpu.memory_space<vmem>>, vector<8x10xf32>,
    return
  }
}

</mosaic_0001>

<bundles_post_ra>
// kernel: tpu_custom_call.1
= control target key start
LH: loop header
LB: loop body
LE: loop exit
PB: predicated region body
PF: predicated region fallthrough
CT: control target
= control target key end

     0   :  { %10 = vsyncpa [#allocation3], 0  ;;  %s324_s0 = inlined_call_operand.hbm [shape: f32[8,10], index: 0, kind: input, shape index: {}]   ;;  %s325_s1 = inlined_call_operand.hbm [shape: f32[10,10], index: 1, kind: input, shape index: {}]   ;;  %s326_s2 = inlined_call_operand.vmem [shape: f32[1,10], index: 2, kind: input, shape index: {}]   ;;  %s327_s3 = inlined_call_operand.hbm [shape: f32[10,10], index: 3, kind: input, shape index: {}]   ;;  %s328_s4 = inlined_call_operand.vmem [shape: f32[1,10], index: 4, kind: input, shape index: {}]   ;;  %s329_s5 = inlined_call_operand.hbm [shape: f32[8,10], index: 5, kind: output, shape index: {}]  }
   0x1   :  { %11 = vsyncpa [#allocation6], 0  ;;  %s28_s20 = sshll.u32 %s325_s1, 4  ;;  %s29_s20 = int_to_ptr.hbm [resolvable:$true] %s28_s20 }
   0x2   :  { %12 = vsyncpa [#allocation4], 0  ;;  %s267_s21 = smov [#allocation5]   ;;  %s18_s25 = sshll.u32 %s324_s0, 4  ;;  %s19_s25 = int_to_ptr.hbm [resolvable:$true] %s18_s25 }
   0x3   :  { %s30_s22 = sshll.u32 %s267_s21, 4  ;;  %s268_s26 = smov 128   ;;  %s31_s22 = int_to_ptr.vmem [resolvable:$true] %s30_s22 }
   0x4   :  { %s269_s27 = smov 8   ;;  %s270_s28 = smov [#allocation2]  }
   0x5   :  { %36 = dma.hbm_to_vmem [thread:$0]  %s29_s20, 256, %s31_s22, [#allocation6], %s268_s26, %s268_s26, %s269_s27  }
   0x6   :  { %s20_s29 = sshll.u32 %s270_s28, 4  ;;  %s43_s7 = sshll.u32 %s327_s3, 4  ;;  %s21_s29 = int_to_ptr.vmem [resolvable:$true] %s20_s29  ;;  %s44_s7 = int_to_ptr.hbm [resolvable:$true] %s43_s7 }
   0x7   :  { %23 = dma.hbm_to_vmem [thread:$0]  %s19_s25, 128, %s21_s29, [#allocation3]  }
   0x8   :  { %s271_s1 = smov [#allocation7]  }
   0x9   :  { %s45_s8 = sshll.u32 %s271_s1, 4  ;;  %s46_s8 = int_to_ptr.vmem [resolvable:$true] %s45_s8 }
   0xa   :  { %51 = dma.hbm_to_vmem [thread:$0]  %s44_s7, 256, %s46_s8, [#allocation6], %s268_s26, %s268_s26, %s269_s27  }
   0xb   :  { %261 = dma.done.wait [#allocation3], 128  }
   0xc   :  { %262 = vsyncadd [#allocation3], 4294967168 }
   0xd   :  { %263 = dma.done.wait [#allocation6], 512  }
   0xe   :  { %264 = vsyncadd [#allocation6], 4294966784  ;;  %vm77_vm0 = vcmask 1041408   ;;  %v68_v0 = vld [vmem:[#allocation5 + $0x8] sm:$0x3]  ;;  %v67_v1 = vld [vmem:[#allocation5] sm:$0xff] }
   0xf   :  { %153 = vmatpush.msk.msra.mxu0 %vm77_vm0, %v68_v0  ;;  %v66_v2 = vld [vmem:[#allocation2] sm:$0xff]  ;;  %vm73_vm1 = vcmask 80896   ;;  %v102_v4 = vld [vmem:[#allocation7] sm:$0xff]  ;;  %s272_s11 = smov [#allocation8]   ;;  %s142_s15 = sshll.u32 %s329_s5, 4  ;;  %s143_s15 = int_to_ptr.hbm [resolvable:$true] %s142_s15 }
  0x10   :  { %v103_v3 = vld [vmem:[#allocation7 + $0x8] sm:$0x3]  ;;  %s140_s12 = sshll.u32 %s272_s11, 4  ;;  %s141_s12 = int_to_ptr.vmem [resolvable:$true] %s140_s12 }
  0x11   :  { %96 = vmatpush.msra.mxu0 %v67_v1  ;;  %155 = vmatpush.msk.msra.mxu1 %vm77_vm0, %v103_v3  ;;  %v163_v5 = vld [vmem:[%s326_s2] ss:$0 sm:$0xff] }
  0x12   :  { %154 = vmatmul.msk.f32.vlgmr.msra.gmra.mxu0 %vm73_vm1, %v66_v2  ;;  %v164_v9 = vld [vmem:[%s328_s4] ss:$0 sm:$0xff] }
  0x13   :  { %129 = vmatpush.msra.mxu1 %v102_v4 }
  0x8f   :  { %v98_v6 = vpop.f32.mrf.mxu0 }
  0x90   :  { %v99_v7 = vadd.f32 %v163_v5, %v98_v6 }
  0x92   :  { %v101_v8 = vmax.f32 %v99_v7, 0.0 }
  0x94   :  { %156 = vmatmul.msk.f32.vlgmr.msra.gmra.mxu1 %vm73_vm1, %v101_v8 }
 0x111   :  { %v131_v10 = vpop.f32.mrf.mxu1 }
 0x112   :  { %v132_v11 = vadd.f32 %v164_v9, %v131_v10 }
 0x114   :  { %134 = vst.msk [vmem:[#allocation8] sm:$0xff] %vm73_vm1, %v132_v11 }
 0x115   :  { %145 = dma.vmem_to_hbm [thread:$0]  %s141_s12, 128, %s143_s15, [#allocation4]  }
 0x116   :  { %265 = dma.done.wait [#allocation4], 128  }
 0x117   :  { %266 = vsyncadd [#allocation4], 4294967168 }
 0x118   :  { %150 = vsyncpa [#allocation3], 1 }
 0x119   :  { %151 = vsyncpa [#allocation6], 1 }
 0x11a   :  { %152 = vsyncpa [#allocation4], 1 }

</bundles_post_ra>
